<compile_context>
chip_gen: v5e
topology: v5e:2x2
jax: 0.10.0
libtpu: 0.0.40
codegen_flags: <defaults>
</compile_context>

<pallas_src>
import jax
import jax.numpy as jnp
from jax import lax
from jax.experimental import pallas as pl
from jax.experimental.pallas import tpu as pltpu


# ----------------------------------------------------------------------------
# Fused RealNVP kernel: all coupling layers in one pass over a batch tile.
# ----------------------------------------------------------------------------
def _realnvp_fused_kernel(
    x_ref,      # (TB, D)      f32  batch tile
    ms_ref,     # (L, 2, D)    f32  [l,0]=mask, [l,1]=scale
    w1_ref,     # (L, D, 2H)   f32  [Ws1 | Wt1]
    b12_ref,    # (L, 2, 2H)   f32  [l,0]=[bs1|bt1], [l,1]=[bs2|bt2]
    w2_ref,     # (L, 2H, 2H)  f32  blockdiag(Ws2, Wt2)
    w3_ref,     # (L, 2H, 2D)  f32  blockdiag(Ws3, Wt3)
    b3_ref,     # (L, 1, 2D)   f32  [bs3 | bt3]
    y_ref,      # (TB, D)      f32  out
    logdet_ref  # (TB, 1)      f32  out (accumulated over all layers)
):
    n_layers = ms_ref.shape[0]
    d = x_ref.shape[1]

    y0 = x_ref[...]                                           # (TB, D)
    ld0 = jnp.zeros((x_ref.shape[0], 1), dtype=jnp.float32)   # (TB, 1)

    def layer_body(l, carry):
        y, ld = carry
        ms = ms_ref[l]                     # (2, D)
        mask = ms[0:1, :]                  # (1, D)
        scale = ms[1:2, :]                 # (1, D)
        one_minus_mask = 1.0 - mask        # hoisted once per layer per tile

        xm = y * mask                      # masked input feeds both nets
        b12 = b12_ref[l]                   # (2, 2H)

        # fused s|t feed-forward on the MXU (f32 acc)
        h = jnp.tanh(
            jnp.dot(xm, w1_ref[l], preferred_element_type=jnp.float32)
            + b12[0:1, :])
        h = jnp.tanh(
            jnp.dot(h, w2_ref[l], preferred_element_type=jnp.float32)
            + b12[1:2, :])
        st = jnp.tanh(
            jnp.dot(h, w3_ref[l], preferred_element_type=jnp.float32)
            + b3_ref[l])                   # (TB, 2D)

        s = st[:, :d] * scale              # (TB, D)
        t = st[:, d:]                      # (TB, D)

        y_new = mask * y + one_minus_mask * (y * jnp.exp(s) + t)
        ld_new = ld + jnp.sum(one_minus_mask * s, axis=-1, keepdims=True)
        return (y_new, ld_new)

    y, ld = lax.fori_loop(0, n_layers, layer_body, (y0, ld0), unroll=True)
    y_ref[...] = y
    logdet_ref[...] = ld


def _choose_batch_tile(batch):
    """Pick a batch tile: multiple of 8 sublanes, small enough for v7x VMEM."""
    if batch <= 512:
        return batch
    for tb in (512, 256, 128, 64, 32, 16, 8):
        if batch % tb == 0:
            return tb
    return batch


def realnvp_forward(x, packed):
    """Fused RealNVP forward.  x: (B, D) f32.  Returns (y (B,D), logdet (B,))."""
    B, D = x.shape
    ms, w1, b12, w2, w3, b3 = (
        packed["ms"], packed["w1"], packed["b12"],
        packed["w2"], packed["w3"], packed["b3"],
    )
    L = ms.shape[0]
    H2 = w1.shape[2]          # 2*H
    D2 = w3.shape[2]          # 2*D

    TB = _choose_batch_tile(B)
    grid = (pl.cdiv(B, TB),)

    full = lambda shape: pl.BlockSpec(shape, lambda i: (0,) * len(shape))

    y, logdet = pl.pallas_call(
        _realnvp_fused_kernel,
        out_shape=(
            jax.ShapeDtypeStruct((B, D), jnp.float32),
            jax.ShapeDtypeStruct((B, 1), jnp.float32),
        ),
        grid=grid,
        in_specs=[
            pl.BlockSpec((TB, D), lambda i: (i, 0)),   # x: batch-tiled
            full((L, 2, D)),                           # mask|scale
            full((L, D, H2)),                          # W1
            full((L, 2, H2)),                          # b1|b2
            full((L, H2, H2)),                         # W2 (blockdiag)
            full((L, H2, D2)),                         # W3 (blockdiag)
            full((L, 1, D2)),                          # b3
        ],
        out_specs=(
            pl.BlockSpec((TB, D), lambda i: (i, 0)),
            pl.BlockSpec((TB, 1), lambda i: (i, 0)),
        ),
        compiler_params=pltpu.CompilerParams(
            dimension_semantics=("parallel",),
        ),
    )(x, ms, w1, b12, w2, w3, b3)
    return y, logdet[:, 0]


# ----------------------------------------------------------------------------
# Parameter construction (mirrors the PyTorch module) + packing for the kernel
# ----------------------------------------------------------------------------
def init_coupling_params(key, mask, input_dim, hidden_dim):
    """Deterministic synthetic init of one Affine_Coupling's parameters."""
    ks = jax.random.split(key, 13)
    scl = 0.1

    def lin(k, fan_in, fan_out):
        return scl * jax.random.normal(k, (fan_in, fan_out), dtype=jnp.float32)

    def bias(k, fan_out):
        return scl * jax.random.normal(k, (1, fan_out), dtype=jnp.float32)

    return {
        "mask": mask.reshape(1, input_dim).astype(jnp.float32),
        "scale": jax.random.normal(ks[0], (1, input_dim), dtype=jnp.float32),
        # s-net: Linear(D,H) tanh, Linear(H,H) tanh, Linear(H,D) tanh
        "ws1": lin(ks[1], input_dim, hidden_dim), "bs1": bias(ks[2], hidden_dim),
        "ws2": lin(ks[3], hidden_dim, hidden_dim), "bs2": bias(ks[4], hidden_dim),
        "ws3": lin(ks[5], hidden_dim, input_dim), "bs3": bias(ks[6], input_dim),
        # t-net
        "wt1": lin(ks[7], input_dim, hidden_dim), "bt1": bias(ks[8], hidden_dim),
        "wt2": lin(ks[9], hidden_dim, hidden_dim), "bt2": bias(ks[10], hidden_dim),
        "wt3": lin(ks[11], hidden_dim, input_dim), "bt3": bias(ks[12], input_dim),
    }


def _block_diag(a, b):
    m, n = a.shape
    p, q = b.shape
    top = jnp.concatenate([a, jnp.zeros((m, q), a.dtype)], axis=1)
    bot = jnp.concatenate([jnp.zeros((p, n), b.dtype), b], axis=1)
    return jnp.concatenate([top, bot], axis=0)


def pack_realnvp_params(layer_params):
    """Stack per-layer dicts into the fused-kernel layout (s/t nets merged)."""
    ms, w1, b12, w2, w3, b3 = [], [], [], [], [], []
    for p in layer_params:
        ms.append(jnp.concatenate([p["mask"], p["scale"]], axis=0))          # (2, D)
        w1.append(jnp.concatenate([p["ws1"], p["wt1"]], axis=1))             # (D, 2H)
        b12.append(jnp.concatenate([
            jnp.concatenate([p["bs1"], p["bt1"]], axis=1),                   # (1, 2H)
            jnp.concatenate([p["bs2"], p["bt2"]], axis=1),                   # (1, 2H)
        ], axis=0))                                                          # (2, 2H)
        w2.append(_block_diag(p["ws2"], p["wt2"]))                           # (2H, 2H)
        w3.append(_block_diag(p["ws3"], p["wt3"]))                           # (2H, 2D)
        b3.append(jnp.concatenate([p["bs3"], p["bt3"]], axis=1))             # (1, 2D)
    return {
        "ms": jnp.stack(ms), "w1": jnp.stack(w1), "b12": jnp.stack(b12),
        "w2": jnp.stack(w2), "w3": jnp.stack(w3), "b3": jnp.stack(b3),
    }


# ----------------------------------------------------------------------------
# Pure-JAX reference (mirrors the PyTorch module) for correctness check
# ----------------------------------------------------------------------------
def reference_forward(x, layer_params):
    def ff(z, w1, b1, w2, b2, w3, b3):
        h = jnp.tanh(z @ w1 + b1)
        h = jnp.tanh(h @ w2 + b2)
        return jnp.tanh(h @ w3 + b3)

    y = x
    logdet_tot = jnp.zeros((x.shape[0],), dtype=jnp.float32)
    for p in layer_params:
        mask = p["mask"]
        xm = y * mask
        s = ff(xm, p["ws1"], p["bs1"], p["ws2"], p["bs2"], p["ws3"], p["bs3"]) * p["scale"]
        t = ff(xm, p["wt1"], p["bt1"], p["wt2"], p["bt2"], p["wt3"], p["bt3"])
        y = mask * y + (1.0 - mask) * (y * jnp.exp(s) + t)
        logdet_tot = logdet_tot + jnp.sum((1.0 - mask) * s, axis=-1)
    return y, logdet_tot


if __name__ == "__main__":
    B = 8          # batch
    D = 8          # input_dim (= len(mask))
    H = 32         # hidden_dim
    N_LAYERS = 4

    key = jax.random.PRNGKey(0)
    kx, kp = jax.random.split(key)
    x = jax.random.normal(kx, (B, D), dtype=jnp.float32)

    # alternating checkerboard masks, like typical RealNVP usage
    base = (jnp.arange(D) % 2).astype(jnp.float32)
    masks = [base if i % 2 == 0 else 1.0 - base for i in range(N_LAYERS)]

    layer_keys = jax.random.split(kp, N_LAYERS)
    layer_params = [
        init_coupling_params(layer_keys[i], masks[i], D, H) for i in range(N_LAYERS)
    ]
    packed = pack_realnvp_params(layer_params)

    y, logdet = realnvp_forward(x, packed)
    y = jax.block_until_ready(y)
    logdet = jax.block_until_ready(logdet)

    y_ref, logdet_ref = reference_forward(x, layer_params)
    assert y.shape == (B, D) and logdet.shape == (B,)
    assert jnp.allclose(y, y_ref, atol=2e-5, rtol=1e-4), (y, y_ref)
    assert jnp.allclose(logdet, logdet_ref, atol=2e-5, rtol=1e-4), (logdet, logdet_ref)

    # TODO(synk): inverse() path and bf16 matmul operands (needs looser tolerance)
    # are not implemented; forward-pass only, per spec.

    print("KERNEL_OK")
</pallas_src>

<mosaic_0001>
module attributes {stable_mosaic.version = 11 : i64} {
  func.func @_realnvp_fused_kernel(%arg0: i32, %arg1: memref<8x8xf32, #tpu.memory_space<vmem>>, %arg2: memref<4x2x8xf32, #tpu.memory_space<vmem>>, %arg3: memref<4x8x64xf32, #tpu.memory_space<vmem>>, %arg4: memref<4x2x64xf32, #tpu.memory_space<vmem>>, %arg5: memref<4x64x64xf32, #tpu.memory_space<vmem>>, %arg6: memref<4x64x16xf32, #tpu.memory_space<vmem>>, %arg7: memref<4x1x16xf32, #tpu.memory_space<vmem>>, %arg8: memref<8x8xf32, #tpu.memory_space<vmem>>, %arg9: memref<8x1xf32, #tpu.memory_space<vmem>>) attributes {dimension_semantics = [#tpu.dimension_semantics<parallel>], iteration_bounds = array<i64: 1>, scalar_prefetch = 0 : i64, scratch_operands = 0 : i64, tpu.core_type = #tpu.core_type<tc>, window_params = [{transform_indices = @transform_0, window_bounds = array<i64: 8, 8>}, {pipeline_mode = #tpu.pipeline_mode<synchronous>, transform_indices = @transform_1, window_bounds = array<i64: 4, 2, 8>}, {pipeline_mode = #tpu.pipeline_mode<synchronous>, transform_indices = @transform_2, window_bounds = array<i64: 4, 8, 64>}, {pipeline_mode = #tpu.pipeline_mode<synchronous>, transform_indices = @transform_3, window_bounds = array<i64: 4, 2, 64>}, {pipeline_mode = #tpu.pipeline_mode<synchronous>, transform_indices = @transform_4, window_bounds = array<i64: 4, 64, 64>}, {pipeline_mode = #tpu.pipeline_mode<synchronous>, transform_indices = @transform_5, window_bounds = array<i64: 4, 64, 16>}, {pipeline_mode = #tpu.pipeline_mode<synchronous>, transform_indices = @transform_6, window_bounds = array<i64: 4, 1, 16>}, {transform_indices = @transform_7, window_bounds = array<i64: 8, 8>}, {transform_indices = @transform_8, window_bounds = array<i64: 8, 1>}]} {
    %c0 = arith.constant 0 : index
    %c0_0 = arith.constant 0 : index
    %0 = vector.load %arg1[%c0, %c0_0] : memref<8x8xf32, #tpu.memory_space<vmem>>, vector<8x8xf32>
    %cst = arith.constant 0.000000e+00 : f32
    %1 = vector.broadcast %cst : f32 to vector<8x1xf32>
    %c0_i32 = arith.constant 0 : i32
    %2 = arith.index_cast %c0_i32 : i32 to index
    %c0_1 = arith.constant 0 : index
    %c0_2 = arith.constant 0 : index
    %3 = vector.load %arg2[%2, %c0_1, %c0_2] : memref<4x2x8xf32, #tpu.memory_space<vmem>>, vector<1x2x8xf32>
    %4 = vector.shape_cast %3 : vector<1x2x8xf32> to vector<2x8xf32>
    %5 = vector.extract_strided_slice %4 {offsets = [0, 0], sizes = [1, 8], strides = [1, 1]} : vector<2x8xf32> to vector<1x8xf32>
    %6 = vector.extract_strided_slice %4 {offsets = [1, 0], sizes = [1, 8], strides = [1, 1]} : vector<2x8xf32> to vector<1x8xf32>
    %cst_3 = arith.constant 1.000000e+00 : f32
    %7 = vector.broadcast %cst_3 : f32 to vector<1x8xf32>
    %8 = arith.subf %7, %5 : vector<1x8xf32>
    %9 = vector.broadcast %5 : vector<1x8xf32> to vector<8x8xf32>
    %10 = arith.mulf %0, %9 : vector<8x8xf32>
    %11 = arith.index_cast %c0_i32 : i32 to index
    %c0_4 = arith.constant 0 : index
    %c0_5 = arith.constant 0 : index
    %12 = vector.load %arg4[%11, %c0_4, %c0_5] : memref<4x2x64xf32, #tpu.memory_space<vmem>>, vector<1x2x64xf32>
    %13 = vector.shape_cast %12 : vector<1x2x64xf32> to vector<2x64xf32>
    %14 = arith.index_cast %c0_i32 : i32 to index
    %c0_6 = arith.constant 0 : index
    %c0_7 = arith.constant 0 : index
    %15 = vector.load %arg3[%14, %c0_6, %c0_7] : memref<4x8x64xf32, #tpu.memory_space<vmem>>, vector<1x8x64xf32>
    %16 = vector.shape_cast %15 : vector<1x8x64xf32> to vector<8x64xf32>
    %cst_8 = arith.constant dense<0.000000e+00> : vector<8x64xf32>
    %17 = tpu.matmul %10, %16, %cst_8 {dimension_numbers = #tpu.dot_dimension_numbers<[1], [0], [0], [1], [0, 0, 1, 1], [], []>} : vector<8x8xf32>, vector<8x64xf32>, vector<8x64xf32> -> vector<8x64xf32>
    %18 = vector.extract_strided_slice %13 {offsets = [0, 0], sizes = [1, 64], strides = [1, 1]} : vector<2x64xf32> to vector<1x64xf32>
    %19 = vector.broadcast %18 : vector<1x64xf32> to vector<8x64xf32>
    %20 = arith.addf %17, %19 : vector<8x64xf32>
    %21 = math.tanh %20 : vector<8x64xf32>
    %22 = arith.index_cast %c0_i32 : i32 to index
    %c0_9 = arith.constant 0 : index
    %c0_10 = arith.constant 0 : index
    %23 = vector.load %arg5[%22, %c0_9, %c0_10] : memref<4x64x64xf32, #tpu.memory_space<vmem>>, vector<1x64x64xf32>
    %24 = vector.shape_cast %23 : vector<1x64x64xf32> to vector<64x64xf32>
    %cst_11 = arith.constant dense<0.000000e+00> : vector<8x64xf32>
    %25 = tpu.matmul %21, %24, %cst_11 {dimension_numbers = #tpu.dot_dimension_numbers<[1], [0], [0], [1], [0, 0, 1, 1], [], []>} : vector<8x64xf32>, vector<64x64xf32>, vector<8x64xf32> -> vector<8x64xf32>
    %26 = vector.extract_strided_slice %13 {offsets = [1, 0], sizes = [1, 64], strides = [1, 1]} : vector<2x64xf32> to vector<1x64xf32>
    %27 = vector.broadcast %26 : vector<1x64xf32> to vector<8x64xf32>
    %28 = arith.addf %25, %27 : vector<8x64xf32>
    %29 = math.tanh %28 : vector<8x64xf32>
    %30 = arith.index_cast %c0_i32 : i32 to index
    %c0_12 = arith.constant 0 : index
    %c0_13 = arith.constant 0 : index
    %31 = vector.load %arg6[%30, %c0_12, %c0_13] : memref<4x64x16xf32, #tpu.memory_space<vmem>>, vector<1x64x16xf32>
    %32 = vector.shape_cast %31 : vector<1x64x16xf32> to vector<64x16xf32>
    %cst_14 = arith.constant dense<0.000000e+00> : vector<8x16xf32>
    %33 = tpu.matmul %29, %32, %cst_14 {dimension_numbers = #tpu.dot_dimension_numbers<[1], [0], [0], [1], [0, 0, 1, 1], [], []>} : vector<8x64xf32>, vector<64x16xf32>, vector<8x16xf32> -> vector<8x16xf32>
    %34 = arith.index_cast %c0_i32 : i32 to index
    %c0_15 = arith.constant 0 : index
    %c0_16 = arith.constant 0 : index
    %35 = vector.load %arg7[%34, %c0_15, %c0_16] : memref<4x1x16xf32, #tpu.memory_space<vmem>>, vector<1x1x16xf32>
    %36 = vector.shape_cast %35 : vector<1x1x16xf32> to vector<1x16xf32>
    %37 = vector.broadcast %36 : vector<1x16xf32> to vector<8x16xf32>
    %38 = arith.addf %33, %37 : vector<8x16xf32>
    %39 = math.tanh %38 : vector<8x16xf32>
    %40 = vector.extract_strided_slice %39 {offsets = [0, 0], sizes = [8, 8], strides = [1, 1]} : vector<8x16xf32> to vector<8x8xf32>
    %41 = vector.broadcast %6 : vector<1x8xf32> to vector<8x8xf32>
    %42 = arith.mulf %40, %41 : vector<8x8xf32>
    %43 = vector.extract_strided_slice %39 {offsets = [0, 8], sizes = [8, 8], strides = [1, 1]} : vector<8x16xf32> to vector<8x8xf32>
    %44 = vector.broadcast %5 : vector<1x8xf32> to vector<8x8xf32>
    %45 = arith.mulf %44, %0 : vector<8x8xf32>
    %46 = math.exp %42 : vector<8x8xf32>
    %47 = arith.mulf %0, %46 : vector<8x8xf32>
    %48 = arith.addf %47, %43 : vector<8x8xf32>
    %49 = vector.broadcast %8 : vector<1x8xf32> to vector<8x8xf32>
    %50 = arith.mulf %49, %48 : vector<8x8xf32>
    %51 = arith.addf %45, %50 : vector<8x8xf32>
    %52 = vector.broadcast %8 : vector<1x8xf32> to vector<8x8xf32>
    %53 = arith.mulf %52, %42 : vector<8x8xf32>
    %cst_17 = arith.constant dense<0.000000e+00> : vector<8xf32>
    %54 = vector.multi_reduction <add>, %53, %cst_17 [1] : vector<8x8xf32> to vector<8xf32>
    %55 = vector.shape_cast %54 : vector<8xf32> to vector<8x1xf32>
    %56 = arith.addf %1, %55 : vector<8x1xf32>
    %c1_i32 = arith.constant 1 : i32
    %57 = arith.index_cast %c1_i32 : i32 to index
    %c0_18 = arith.constant 0 : index
    %c0_19 = arith.constant 0 : index
    %58 = vector.load %arg2[%57, %c0_18, %c0_19] : memref<4x2x8xf32, #tpu.memory_space<vmem>>, vector<1x2x8xf32>
    %59 = vector.shape_cast %58 : vector<1x2x8xf32> to vector<2x8xf32>
    %60 = vector.extract_strided_slice %59 {offsets = [0, 0], sizes = [1, 8], strides = [1, 1]} : vector<2x8xf32> to vector<1x8xf32>
    %61 = vector.extract_strided_slice %59 {offsets = [1, 0], sizes = [1, 8], strides = [1, 1]} : vector<2x8xf32> to vector<1x8xf32>
    %cst_20 = arith.constant 1.000000e+00 : f32
    %62 = vector.broadcast %cst_20 : f32 to vector<1x8xf32>
    %63 = arith.subf %62, %60 : vector<1x8xf32>
    %64 = vector.broadcast %60 : vector<1x8xf32> to vector<8x8xf32>
    %65 = arith.mulf %51, %64 : vector<8x8xf32>
    %66 = arith.index_cast %c1_i32 : i32 to index
    %c0_21 = arith.constant 0 : index
    %c0_22 = arith.constant 0 : index
    %67 = vector.load %arg4[%66, %c0_21, %c0_22] : memref<4x2x64xf32, #tpu.memory_space<vmem>>, vector<1x2x64xf32>
    %68 = vector.shape_cast %67 : vector<1x2x64xf32> to vector<2x64xf32>
    %69 = arith.index_cast %c1_i32 : i32 to index
    %c0_23 = arith.constant 0 : index
    %c0_24 = arith.constant 0 : index
    %70 = vector.load %arg3[%69, %c0_23, %c0_24] : memref<4x8x64xf32, #tpu.memory_space<vmem>>, vector<1x8x64xf32>
    %71 = vector.shape_cast %70 : vector<1x8x64xf32> to vector<8x64xf32>
    %cst_25 = arith.constant dense<0.000000e+00> : vector<8x64xf32>
    %72 = tpu.matmul %65, %71, %cst_25 {dimension_numbers = #tpu.dot_dimension_numbers<[1], [0], [0], [1], [0, 0, 1, 1], [], []>} : vector<8x8xf32>, vector<8x64xf32>, vector<8x64xf32> -> vector<8x64xf32>
    %73 = vector.extract_strided_slice %68 {offsets = [0, 0], sizes = [1, 64], strides = [1, 1]} : vector<2x64xf32> to vector<1x64xf32>
    %74 = vector.broadcast %73 : vector<1x64xf32> to vector<8x64xf32>
    %75 = arith.addf %72, %74 : vector<8x64xf32>
    %76 = math.tanh %75 : vector<8x64xf32>
    %77 = arith.index_cast %c1_i32 : i32 to index
    %c0_26 = arith.constant 0 : index
    %c0_27 = arith.constant 0 : index
    %78 = vector.load %arg5[%77, %c0_26, %c0_27] : memref<4x64x64xf32, #tpu.memory_space<vmem>>, vector<1x64x64xf32>
    %79 = vector.shape_cast %78 : vector<1x64x64xf32> to vector<64x64xf32>
    %cst_28 = arith.constant dense<0.000000e+00> : vector<8x64xf32>
    %80 = tpu.matmul %76, %79, %cst_28 {dimension_numbers = #tpu.dot_dimension_numbers<[1], [0], [0], [1], [0, 0, 1, 1], [], []>} : vector<8x64xf32>, vector<64x64xf32>, vector<8x64xf32> -> vector<8x64xf32>
    %81 = vector.extract_strided_slice %68 {offsets = [1, 0], sizes = [1, 64], strides = [1, 1]} : vector<2x64xf32> to vector<1x64xf32>
    %82 = vector.broadcast %81 : vector<1x64xf32> to vector<8x64xf32>
    %83 = arith.addf %80, %82 : vector<8x64xf32>
    %84 = math.tanh %83 : vector<8x64xf32>
    %85 = arith.index_cast %c1_i32 : i32 to index
    %c0_29 = arith.constant 0 : index
    %c0_30 = arith.constant 0 : index
    %86 = vector.load %arg6[%85, %c0_29, %c0_30] : memref<4x64x16xf32, #tpu.memory_space<vmem>>, vector<1x64x16xf32>
    %87 = vector.shape_cast %86 : vector<1x64x16xf32> to vector<64x16xf32>
    %cst_31 = arith.constant dense<0.000000e+00> : vector<8x16xf32>
    %88 = tpu.matmul %84, %87, %cst_31 {dimension_numbers = #tpu.dot_dimension_numbers<[1], [0], [0], [1], [0, 0, 1, 1], [], []>} : vector<8x64xf32>, vector<64x16xf32>, vector<8x16xf32> -> vector<8x16xf32>
    %89 = arith.index_cast %c1_i32 : i32 to index
    %c0_32 = arith.constant 0 : index
    %c0_33 = arith.constant 0 : index
    %90 = vector.load %arg7[%89, %c0_32, %c0_33] : memref<4x1x16xf32, #tpu.memory_space<vmem>>, vector<1x1x16xf32>
    %91 = vector.shape_cast %90 : vector<1x1x16xf32> to vector<1x16xf32>
    %92 = vector.broadcast %91 : vector<1x16xf32> to vector<8x16xf32>
    %93 = arith.addf %88, %92 : vector<8x16xf32>
    %94 = math.tanh %93 : vector<8x16xf32>
    %95 = vector.extract_strided_slice %94 {offsets = [0, 0], sizes = [8, 8], strides = [1, 1]} : vector<8x16xf32> to vector<8x8xf32>
    %96 = vector.broadcast %61 : vector<1x8xf32> to vector<8x8xf32>
    %97 = arith.mulf %95, %96 : vector<8x8xf32>
    %98 = vector.extract_strided_slice %94 {offsets = [0, 8], sizes = [8, 8], strides = [1, 1]} : vector<8x16xf32> to vector<8x8xf32>
    %99 = vector.broadcast %60 : vector<1x8xf32> to vector<8x8xf32>
    %100 = arith.mulf %99, %51 : vector<8x8xf32>
    %101 = math.exp %97 : vector<8x8xf32>
    %102 = arith.mulf %51, %101 : vector<8x8xf32>
    %103 = arith.addf %102, %98 : vector<8x8xf32>
    %104 = vector.broadcast %63 : vector<1x8xf32> to vector<8x8xf32>
    %105 = arith.mulf %104, %103 : vector<8x8xf32>
    %106 = arith.addf %100, %105 : vector<8x8xf32>
    %107 = vector.broadcast %63 : vector<1x8xf32> to vector<8x8xf32>
    %108 = arith.mulf %107, %97 : vector<8x8xf32>
    %cst_34 = arith.constant dense<0.000000e+00> : vector<8xf32>
    %109 = vector.multi_reduction <add>, %108, %cst_34 [1] : vector<8x8xf32> to vector<8xf32>
    %110 = vector.shape_cast %109 : vector<8xf32> to vector<8x1xf32>
    %111 = arith.addf %56, %110 : vector<8x1xf32>
    %c2_i32 = arith.constant 2 : i32
    %112 = arith.index_cast %c2_i32 : i32 to index
    %c0_35 = arith.constant 0 : index
    %c0_36 = arith.constant 0 : index
    %113 = vector.load %arg2[%112, %c0_35, %c0_36] : memref<4x2x8xf32, #tpu.memory_space<vmem>>, vector<1x2x8xf32>
    %114 = vector.shape_cast %113 : vector<1x2x8xf32> to vector<2x8xf32>
    %115 = vector.extract_strided_slice %114 {offsets = [0, 0], sizes = [1, 8], strides = [1, 1]} : vector<2x8xf32> to vector<1x8xf32>
    %116 = vector.extract_strided_slice %114 {offsets = [1, 0], sizes = [1, 8], strides = [1, 1]} : vector<2x8xf32> to vector<1x8xf32>
    %cst_37 = arith.constant 1.000000e+00 : f32
    %117 = vector.broadcast %cst_37 : f32 to vector<1x8xf32>
    %118 = arith.subf %117, %115 : vector<1x8xf32>
    %119 = vector.broadcast %115 : vector<1x8xf32> to vector<8x8xf32>
    %120 = arith.mulf %106, %119 : vector<8x8xf32>
    %121 = arith.index_cast %c2_i32 : i32 to index
    %c0_38 = arith.constant 0 : index
    %c0_39 = arith.constant 0 : index
    %122 = vector.load %arg4[%121, %c0_38, %c0_39] : memref<4x2x64xf32, #tpu.memory_space<vmem>>, vector<1x2x64xf32>
    %123 = vector.shape_cast %122 : vector<1x2x64xf32> to vector<2x64xf32>
    %124 = arith.index_cast %c2_i32 : i32 to index
    %c0_40 = arith.constant 0 : index
    %c0_41 = arith.constant 0 : index
    %125 = vector.load %arg3[%124, %c0_40, %c0_41] : memref<4x8x64xf32, #tpu.memory_space<vmem>>, vector<1x8x64xf32>
    %126 = vector.shape_cast %125 : vector<1x8x64xf32> to vector<8x64xf32>
    %cst_42 = arith.constant dense<0.000000e+00> : vector<8x64xf32>
    %127 = tpu.matmul %120, %126, %cst_42 {dimension_numbers = #tpu.dot_dimension_numbers<[1], [0], [0], [1], [0, 0, 1, 1], [], []>} : vector<8x8xf32>, vector<8x64xf32>, vector<8x64xf32> -> vector<8x64xf32>
    %128 = vector.extract_strided_slice %123 {offsets = [0, 0], sizes = [1, 64], strides = [1, 1]} : vector<2x64xf32> to vector<1x64xf32>
    %129 = vector.broadcast %128 : vector<1x64xf32> to vector<8x64xf32>
    %130 = arith.addf %127, %129 : vector<8x64xf32>
    %131 = math.tanh %130 : vector<8x64xf32>
    %132 = arith.index_cast %c2_i32 : i32 to index
    %c0_43 = arith.constant 0 : index
    %c0_44 = arith.constant 0 : index
    %133 = vector.load %arg5[%132, %c0_43, %c0_44] : memref<4x64x64xf32, #tpu.memory_space<vmem>>, vector<1x64x64xf32>
    %134 = vector.shape_cast %133 : vector<1x64x64xf32> to vector<64x64xf32>
    %cst_45 = arith.constant dense<0.000000e+00> : vector<8x64xf32>
    %135 = tpu.matmul %131, %134, %cst_45 {dimension_numbers = #tpu.dot_dimension_numbers<[1], [0], [0], [1], [0, 0, 1, 1], [], []>} : vector<8x64xf32>, vector<64x64xf32>, vector<8x64xf32> -> vector<8x64xf32>
    %136 = vector.extract_strided_slice %123 {offsets = [1, 0], sizes = [1, 64], strides = [1, 1]} : vector<2x64xf32> to vector<1x64xf32>
    %137 = vector.broadcast %136 : vector<1x64xf32> to vector<8x64xf32>
    %138 = arith.addf %135, %137 : vector<8x64xf32>
    %139 = math.tanh %138 : vector<8x64xf32>
    %140 = arith.index_cast %c2_i32 : i32 to index
    %c0_46 = arith.constant 0 : index
    %c0_47 = arith.constant 0 : index
    %141 = vector.load %arg6[%140, %c0_46, %c0_47] : memref<4x64x16xf32, #tpu.memory_space<vmem>>, vector<1x64x16xf32>
    %142 = vector.shape_cast %141 : vector<1x64x16xf32> to vector<64x16xf32>
    %cst_48 = arith.constant dense<0.000000e+00> : vector<8x16xf32>
    %143 = tpu.matmul %139, %142, %cst_48 {dimension_numbers = #tpu.dot_dimension_numbers<[1], [0], [0], [1], [0, 0, 1, 1], [], []>} : vector<8x64xf32>, vector<64x16xf32>, vector<8x16xf32> -> vector<8x16xf32>
    %144 = arith.index_cast %c2_i32 : i32 to index
    %c0_49 = arith.constant 0 : index
    %c0_50 = arith.constant 0 : index
    %145 = vector.load %arg7[%144, %c0_49, %c0_50] : memref<4x1x16xf32, #tpu.memory_space<vmem>>, vector<1x1x16xf32>
    %146 = vector.shape_cast %145 : vector<1x1x16xf32> to vector<1x16xf32>
    %147 = vector.broadcast %146 : vector<1x16xf32> to vector<8x16xf32>
    %148 = arith.addf %143, %147 : vector<8x16xf32>
    %149 = math.tanh %148 : vector<8x16xf32>
    %150 = vector.extract_strided_slice %149 {offsets = [0, 0], sizes = [8, 8], strides = [1, 1]} : vector<8x16xf32> to vector<8x8xf32>
    %151 = vector.broadcast %116 : vector<1x8xf32> to vector<8x8xf32>
    %152 = arith.mulf %150, %151 : vector<8x8xf32>
    %153 = vector.extract_strided_slice %149 {offsets = [0, 8], sizes = [8, 8], strides = [1, 1]} : vector<8x16xf32> to vector<8x8xf32>
    %154 = vector.broadcast %115 : vector<1x8xf32> to vector<8x8xf32>
    %155 = arith.mulf %154, %106 : vector<8x8xf32>
    %156 = math.exp %152 : vector<8x8xf32>
    %157 = arith.mulf %106, %156 : vector<8x8xf32>
    %158 = arith.addf %157, %153 : vector<8x8xf32>
    %159 = vector.broadcast %118 : vector<1x8xf32> to vector<8x8xf32>
    %160 = arith.mulf %159, %158 : vector<8x8xf32>
    %161 = arith.addf %155, %160 : vector<8x8xf32>
    %162 = vector.broadcast %118 : vector<1x8xf32> to vector<8x8xf32>
    %163 = arith.mulf %162, %152 : vector<8x8xf32>
    %cst_51 = arith.constant dense<0.000000e+00> : vector<8xf32>
    %164 = vector.multi_reduction <add>, %163, %cst_51 [1] : vector<8x8xf32> to vector<8xf32>
    %165 = vector.shape_cast %164 : vector<8xf32> to vector<8x1xf32>
    %166 = arith.addf %111, %165 : vector<8x1xf32>
    %c3_i32 = arith.constant 3 : i32
    %167 = arith.index_cast %c3_i32 : i32 to index
    %c0_52 = arith.constant 0 : index
    %c0_53 = arith.constant 0 : index
    %168 = vector.load %arg2[%167, %c0_52, %c0_53] : memref<4x2x8xf32, #tpu.memory_space<vmem>>, vector<1x2x8xf32>
    %169 = vector.shape_cast %168 : vector<1x2x8xf32> to vector<2x8xf32>
    %170 = vector.extract_strided_slice %169 {offsets = [0, 0], sizes = [1, 8], strides = [1, 1]} : vector<2x8xf32> to vector<1x8xf32>
    %171 = vector.extract_strided_slice %169 {offsets = [1, 0], sizes = [1, 8], strides = [1, 1]} : vector<2x8xf32> to vector<1x8xf32>
    %cst_54 = arith.constant 1.000000e+00 : f32
    %172 = vector.broadcast %cst_54 : f32 to vector<1x8xf32>
    %173 = arith.subf %172, %170 : vector<1x8xf32>
    %174 = vector.broadcast %170 : vector<1x8xf32> to vector<8x8xf32>
    %175 = arith.mulf %161, %174 : vector<8x8xf32>
    %176 = arith.index_cast %c3_i32 : i32 to index
    %c0_55 = arith.constant 0 : index
    %c0_56 = arith.constant 0 : index
    %177 = vector.load %arg4[%176, %c0_55, %c0_56] : memref<4x2x64xf32, #tpu.memory_space<vmem>>, vector<1x2x64xf32>
    %178 = vector.shape_cast %177 : vector<1x2x64xf32> to vector<2x64xf32>
    %179 = arith.index_cast %c3_i32 : i32 to index
    %c0_57 = arith.constant 0 : index
    %c0_58 = arith.constant 0 : index
    %180 = vector.load %arg3[%179, %c0_57, %c0_58] : memref<4x8x64xf32, #tpu.memory_space<vmem>>, vector<1x8x64xf32>
    %181 = vector.shape_cast %180 : vector<1x8x64xf32> to vector<8x64xf32>
    %cst_59 = arith.constant dense<0.000000e+00> : vector<8x64xf32>
    %182 = tpu.matmul %175, %181, %cst_59 {dimension_numbers = #tpu.dot_dimension_numbers<[1], [0], [0], [1], [0, 0, 1, 1], [], []>} : vector<8x8xf32>, vector<8x64xf32>, vector<8x64xf32> -> vector<8x64xf32>
    %183 = vector.extract_strided_slice %178 {offsets = [0, 0], sizes = [1, 64], strides = [1, 1]} : vector<2x64xf32> to vector<1x64xf32>
    %184 = vector.broadcast %183 : vector<1x64xf32> to vector<8x64xf32>
    %185 = arith.addf %182, %184 : vector<8x64xf32>
    %186 = math.tanh %185 : vector<8x64xf32>
    %187 = arith.index_cast %c3_i32 : i32 to index
    %c0_60 = arith.constant 0 : index
    %c0_61 = arith.constant 0 : index
    %188 = vector.load %arg5[%187, %c0_60, %c0_61] : memref<4x64x64xf32, #tpu.memory_space<vmem>>, vector<1x64x64xf32>
    %189 = vector.shape_cast %188 : vector<1x64x64xf32> to vector<64x64xf32>
    %cst_62 = arith.constant dense<0.000000e+00> : vector<8x64xf32>
    %190 = tpu.matmul %186, %189, %cst_62 {dimension_numbers = #tpu.dot_dimension_numbers<[1], [0], [0], [1], [0, 0, 1, 1], [], []>} : vector<8x64xf32>, vector<64x64xf32>, vector<8x64xf32> -> vector<8x64xf32>
    %191 = vector.extract_strided_slice %178 {offsets = [1, 0], sizes = [1, 64], strides = [1, 1]} : vector<2x64xf32> to vector<1x64xf32>
    %192 = vector.broadcast %191 : vector<1x64xf32> to vector<8x64xf32>
    %193 = arith.addf %190, %192 : vector<8x64xf32>
    %194 = math.tanh %193 : vector<8x64xf32>
    %195 = arith.index_cast %c3_i32 : i32 to index
    %c0_63 = arith.constant 0 : index
    %c0_64 = arith.constant 0 : index
    %196 = vector.load %arg6[%195, %c0_63, %c0_64] : memref<4x64x16xf32, #tpu.memory_space<vmem>>, vector<1x64x16xf32>
    %197 = vector.shape_cast %196 : vector<1x64x16xf32> to vector<64x16xf32>
    %cst_65 = arith.constant dense<0.000000e+00> : vector<8x16xf32>
    %198 = tpu.matmul %194, %197, %cst_65 {dimension_numbers = #tpu.dot_dimension_numbers<[1], [0], [0], [1], [0, 0, 1, 1], [], []>} : vector<8x64xf32>, vector<64x16xf32>, vector<8x16xf32> -> vector<8x16xf32>
    %199 = arith.index_cast %c3_i32 : i32 to index
    %c0_66 = arith.constant 0 : index
    %c0_67 = arith.constant 0 : index
    %200 = vector.load %arg7[%199, %c0_66, %c0_67] : memref<4x1x16xf32, #tpu.memory_space<vmem>>, vector<1x1x16xf32>
    %201 = vector.shape_cast %200 : vector<1x1x16xf32> to vector<1x16xf32>
    %202 = vector.broadcast %201 : vector<1x16xf32> to vector<8x16xf32>
    %203 = arith.addf %198, %202 : vector<8x16xf32>
    %204 = math.tanh %203 : vector<8x16xf32>
    %205 = vector.extract_strided_slice %204 {offsets = [0, 0], sizes = [8, 8], strides = [1, 1]} : vector<8x16xf32> to vector<8x8xf32>
    %206 = vector.broadcast %171 : vector<1x8xf32> to vector<8x8xf32>
    %207 = arith.mulf %205, %206 : vector<8x8xf32>
    %208 = vector.extract_strided_slice %204 {offsets = [0, 8], sizes = [8, 8], strides = [1, 1]} : vector<8x16xf32> to vector<8x8xf32>
    %209 = vector.broadcast %170 : vector<1x8xf32> to vector<8x8xf32>
    %210 = arith.mulf %209, %161 : vector<8x8xf32>
    %211 = math.exp %207 : vector<8x8xf32>
    %212 = arith.mulf %161, %211 : vector<8x8xf32>
    %213 = arith.addf %212, %208 : vector<8x8xf32>
    %214 = vector.broadcast %173 : vector<1x8xf32> to vector<8x8xf32>
    %215 = arith.mulf %214, %213 : vector<8x8xf32>
    %216 = arith.addf %210, %215 : vector<8x8xf32>
    %217 = vector.broadcast %173 : vector<1x8xf32> to vector<8x8xf32>
    %218 = arith.mulf %217, %207 : vector<8x8xf32>
    %cst_68 = arith.constant dense<0.000000e+00> : vector<8xf32>
    %219 = vector.multi_reduction <add>, %218, %cst_68 [1] : vector<8x8xf32> to vector<8xf32>
    %220 = vector.shape_cast %219 : vector<8xf32> to vector<8x1xf32>
    %221 = arith.addf %166, %220 : vector<8x1xf32>
    %c4_i32 = arith.constant 4 : i32
    %c0_69 = arith.constant 0 : index
    %c0_70 = arith.constant 0 : index
    %222 = vector.load %arg8[%c0_69, %c0_70] : memref<8x8xf32, #tpu.memory_space<vmem>>, vector<8x8xf32>
    tpu.vector_store %arg8[%c0_69, %c0_70], %216 {strides = array<i32>} : memref<8x8xf32, #tpu.memory_space<vmem>>, vector<8x8xf32>,
    %c0_71 = arith.constant 0 : index
    %c0_72 = arith.constant 0 : index
    %223 = vector.load %arg9[%c0_71, %c0_72] : memref<8x1xf32, #tpu.memory_space<vmem>>, vector<8x1xf32>
    tpu.vector_store %arg9[%c0_71, %c0_72], %221 {strides = array<i32>} : memref<8x1xf32, #tpu.memory_space<vmem>>, vector<8x1xf32>,
    return
  }
  func.func @transform_0(%arg0: i32) -> (i32, i32) {
    %c0_i32 = arith.constant 0 : i32
    %c0_i32_0 = arith.constant 0 : i32
    return %arg0, %c0_i32 : i32, i32
  }
  func.func @transform_1(%arg0: i32) -> (i32, i32, i32) {
    %c0_i32 = arith.constant 0 : i32
    %c0_i32_0 = arith.constant 0 : i32
    %c0_i32_1 = arith.constant 0 : i32
    %c0_i32_2 = arith.constant 0 : i32
    return %c0_i32, %c0_i32_0, %c0_i32_1 : i32, i32, i32
  }
  func.func @transform_2(%arg0: i32) -> (i32, i32, i32) {
    %c0_i32 = arith.constant 0 : i32
    %c0_i32_0 = arith.constant 0 : i32
    %c0_i32_1 = arith.constant 0 : i32
    %c0_i32_2 = arith.constant 0 : i32
    return %c0_i32, %c0_i32_0, %c0_i32_1 : i32, i32, i32
  }
  func.func @transform_3(%arg0: i32) -> (i32, i32, i32) {
    %c0_i32 = arith.constant 0 : i32
    %c0_i32_0 = arith.constant 0 : i32
    %c0_i32_1 = arith.constant 0 : i32
    %c0_i32_2 = arith.constant 0 : i32
    return %c0_i32, %c0_i32_0, %c0_i32_1 : i32, i32, i32
  }
  func.func @transform_4(%arg0: i32) -> (i32, i32, i32) {
    %c0_i32 = arith.constant 0 : i32
    %c0_i32_0 = arith.constant 0 : i32
    %c0_i32_1 = arith.constant 0 : i32
    %c0_i32_2 = arith.constant 0 : i32
    return %c0_i32, %c0_i32_0, %c0_i32_1 : i32, i32, i32
  }
  func.func @transform_5(%arg0: i32) -> (i32, i32, i32) {
    %c0_i32 = arith.constant 0 : i32
    %c0_i32_0 = arith.constant 0 : i32
    %c0_i32_1 = arith.constant 0 : i32
    %c0_i32_2 = arith.constant 0 : i32
    return %c0_i32, %c0_i32_0, %c0_i32_1 : i32, i32, i32
  }
  func.func @transform_6(%arg0: i32) -> (i32, i32, i32) {
    %c0_i32 = arith.constant 0 : i32
    %c0_i32_0 = arith.constant 0 : i32
    %c0_i32_1 = arith.constant 0 : i32
    %c0_i32_2 = arith.constant 0 : i32
    return %c0_i32, %c0_i32_0, %c0_i32_1 : i32, i32, i32
  }
  func.func @transform_7(%arg0: i32) -> (i32, i32) {
    %c0_i32 = arith.constant 0 : i32
    %c0_i32_0 = arith.constant 0 : i32
    return %arg0, %c0_i32 : i32, i32
  }
  func.func @transform_8(%arg0: i32) -> (i32, i32) {
    %c0_i32 = arith.constant 0 : i32
    %c0_i32_0 = arith.constant 0 : i32
    return %arg0, %c0_i32 : i32, i32
  }
}

</mosaic_0001>

<bundles_post_ra>
// kernel: tpu_custom_call.1
= control target key start
LH: loop header
LB: loop body
LE: loop exit
PB: predicated region body
PF: predicated region fallthrough
CT: control target
= control target key end

     0   :  { %vm37_vm0 = vcmask 64512   ;;  %s1048_s0 = inlined_call_operand.vmem [shape: f32[8,8], index: 0, kind: input, shape index: {}]   ;;  %s1049_s1 = inlined_call_operand.vmem [shape: f32[4,2,8], index: 1, kind: input, shape index: {}]   ;;  %s1050_s2 = inlined_call_operand.vmem [shape: f32[4,8,64], index: 2, kind: input, shape index: {}]   ;;  %s1051_s3 = inlined_call_operand.vmem [shape: f32[4,2,64], index: 3, kind: input, shape index: {}]   ;;  %s1052_s4 = inlined_call_operand.vmem [shape: f32[4,64,64], index: 4, kind: input, shape index: {}]   ;;  %s1053_s5 = inlined_call_operand.vmem [shape: f32[4,64,16], index: 5, kind: input, shape index: {}]   ;;  %s1054_s6 = inlined_call_operand.vmem [shape: f32[4,1,16], index: 6, kind: input, shape index: {}]   ;;  %s1055_s7 = inlined_call_operand.hbm [shape: f32[8,8], index: 7, kind: output, shape index: {0}]   ;;  %s1056_s8 = inlined_call_operand.vmem [shape: f32[8,1], index: 8, kind: output, shape index: {1}]  }
   0x1   :  { %v35_v0 = vld [vmem:[%s1050_s2] sm:$0xff]  ;;  %v69_v4 = vld [vmem:[%s1052_s4 + $0x38] sm:$0xff]  ;;  %v68_v5 = vld [vmem:[%s1052_s4 + $0x30] sm:$0xff] }
   0x2   :  { %v734_v1 = vld [vmem:[%s1048_s0] sm:$0xff]  ;;  %56 = vmatpush.msra.mxu0 %v35_v0  ;;  %83 = vmatpush.msra.mxu1 %v69_v4  ;;  %v67_v7 = vld [vmem:[%s1052_s4 + $0x28] sm:$0xff] }
   0x3   :  { %v739_v2 = vld [vmem:[%s1049_s1] sm:$0x3] }
   0x4   :  { %v32_v3 = vperm.slane %v739_v2, 0  ;;  %84 = vmatpush.msra.mxu1 %v68_v5 }
   0x6   :  { %v749_v6 = vmul.f32 %v32_v3, %v734_v1 }
   0x7   :  { %14 = vsyncpa [#allocation3], 0  ;;  %85 = vmatpush.msra.mxu1 %v67_v7  ;;  %v66_v8 = vld [vmem:[%s1052_s4 + $0x20] sm:$0xff]  ;;  %v65_v9 = vld [vmem:[%s1052_s4 + $0x18] sm:$0xff]  ;;  %vm71_vm1 = vcmask 523264   ;;  %s681_s23 = smov 120  }
   0x8   :  { %545 = vmatmul.msk.f32.vlgmr.msra.gmra.mxu0 %vm37_vm0, %v749_v6  ;;  %v64_v10 = vld [vmem:[%s1052_s4 + $0x10] sm:$0xff]  ;;  %v63_v11 = vld [vmem:[%s1052_s4 + $0x8] sm:$0xff]  ;;  %v62_v12 = vld [vmem:[%s1052_s4] sm:$0xff]  ;;  %v132_v37 = vperm.slane %v739_v2, 1  ;;  %v31_v42 = vsub.f32 1.0, %v739_v2  ;;  %s532_s29 = sshll.u32 %s1055_s7, 4  ;;  %s533_s29 = int_to_ptr.hbm [resolvable:$true] %s532_s29 }
   0x9   :  { %86 = vmatpush.msra.mxu1 %v66_v8  ;;  %v103_v13 = vld [vmem:[%s1053_s5 + $0x38] sm:$0xff]  ;;  %v102_v14 = vld [vmem:[%s1053_s5 + $0x30] sm:$0xff]  ;;  %v101_v15 = vld [vmem:[%s1053_s5 + $0x28] sm:$0xff]  ;;  %vm523_vm2 = vcmask 7168  }
   0xa   :  { %119 = vmatpush.msra.mxu2 %v103_v13  ;;  %v34_v16 = vld [vmem:[%s1051_s3] sm:$0x3]  ;;  %v99_v22 = vld [vmem:[%s1053_s5 + $0x18] sm:$0xff]  ;;  %v98_v23 = vld [vmem:[%s1053_s5 + $0x10] sm:$0xff]  ;;  %v825_v46 = vperm.slane %v31_v42, 0 }
   0xb   :  { %87 = vmatpush.msra.mxu1 %v65_v9  ;;  %v36_v17 = vperm.slane %v34_v16, 0  ;;  %v100_v21 = vld [vmem:[%s1053_s5 + $0x20] sm:$0xff]  ;;  %v97_v24 = vld [vmem:[%s1053_s5 + $0x8] sm:$0xff]  ;;  %v70_v26 = vperm.slane %v34_v16, 1  ;;  %v559_v35 = vld [vmem:[%s1052_s4 + $0x78] sm:$0xff] }
   0xc   :  { %120 = vmatpush.msra.mxu2 %v102_v14  ;;  %v96_v25 = vld [vmem:[%s1053_s5] sm:$0xff]  ;;  %v550_v34 = vld [vmem:[%s1050_s2 + $0x8] sm:$0xff]  ;;  %v558_v36 = vld [vmem:[%s1052_s4 + $0x70] sm:$0xff]  ;;  %205 = vmatpush.msrb.mxu0 %v559_v35 }
   0xd   :  { %88 = vmatpush.msra.mxu1 %v64_v10  ;;  %v619_v30 = vld [vmem:[%s1054_s6] ss:$0 sm:$0xff]  ;;  %v557_v38 = vld [vmem:[%s1052_s4 + $0x68] sm:$0xff]  ;;  %v548_v44 = vld [vmem:[%s1049_s1 + $0x2] sm:$0x3] }
   0xe   :  { %121 = vmatpush.msra.mxu2 %v101_v15  ;;  %206 = vmatpush.msrb.mxu0 %v558_v36  ;;  %v153_v48 = vperm.slane %v548_v44, 0  ;;  %v556_v52 = vld [vmem:[%s1052_s4 + $0x60] sm:$0xff]  ;;  %v555_v53 = vld [vmem:[%s1052_s4 + $0x58] sm:$0xff]  ;;  %v554_v54 = vld [vmem:[%s1052_s4 + $0x50] sm:$0xff]  ;;  %v152_v13 = vsub.f32 1.0, %v548_v44  ;;  %v256_v14 = vperm.slane %v548_v44, 1 }
   0xf   :  { %89 = vmatpush.msra.mxu1 %v63_v11  ;;  %v553_v55 = vld [vmem:[%s1052_s4 + $0x48] sm:$0xff]  ;;  %v552_v56 = vld [vmem:[%s1052_s4 + $0x40] sm:$0xff]  ;;  %v568_v57 = vld [vmem:[%s1053_s5 + $0x78] sm:$0xff] }
  0x10   :  { %122 = vmatpush.msra.mxu2 %v100_v21  ;;  %207 = vmatpush.msrb.mxu0 %v557_v38  ;;  %v567_v58 = vld [vmem:[%s1053_s5 + $0x70] sm:$0xff]  ;;  %v566_v59 = vld [vmem:[%s1053_s5 + $0x68] sm:$0xff]  ;;  %v549_v60 = vld [vmem:[%s1051_s3 + $0x2] sm:$0x3]  ;;  %v266_v15 = vperm.slane %v152_v13, 0 }
  0x11   :  { %90 = vmatpush.msra.mxu1 %v62_v12  ;;  %243 = vmatpush.msra.mxu3 %v568_v57  ;;  %v159_v61 = vperm.slane %v549_v60, 0  ;;  %v564_v2 = vld [vmem:[%s1053_s5 + $0x58] sm:$0xff]  ;;  %v563_v3 = vld [vmem:[%s1053_s5 + $0x50] sm:$0xff]  ;;  %v562_v4 = vld [vmem:[%s1053_s5 + $0x48] sm:$0xff] }
  0x12   :  { %123 = vmatpush.msra.mxu2 %v99_v22  ;;  %208 = vmatpush.msrb.mxu0 %v556_v52  ;;  %v561_v5 = vld [vmem:[%s1053_s5 + $0x40] sm:$0xff]  ;;  %v582_v21 = vld [vmem:[%s1052_s4 + $0xb8] sm:$0xff]  ;;  %v581_v22 = vld [vmem:[%s1052_s4 + $0xb0] sm:$0xff] }
  0x13   :  { %244 = vmatpush.msra.mxu3 %v567_v58  ;;  %v620_v10 = vld [vmem:[%s1054_s6 + $0x1] ss:$0 sm:$0xff]  ;;  %v578_v35 = vld [vmem:[%s1052_s4 + $0x98] sm:$0xff]  ;;  %v577_v36 = vld [vmem:[%s1052_s4 + $0x90] sm:$0xff] }
  0x14   :  { %124 = vmatpush.msra.mxu2 %v98_v23  ;;  %209 = vmatpush.msrb.mxu0 %v555_v53  ;;  %v580_v23 = vld [vmem:[%s1052_s4 + $0xa8] sm:$0xff]  ;;  %v575_v38 = vld [vmem:[%s1052_s4 + $0x80] sm:$0xff] }
  0x15   :  { %245 = vmatpush.msra.mxu3 %v566_v59  ;;  %v589_v42 = vld [vmem:[%s1053_s5 + $0xa8] sm:$0xff]  ;;  %v584_v53 = vld [vmem:[%s1053_s5 + $0x80] sm:$0xff] }
  0x16   :  { %125 = vmatpush.msra.mxu2 %v97_v24  ;;  %210 = vmatpush.msrb.mxu0 %v554_v54  ;;  %v585_v52 = vld [vmem:[%s1053_s5 + $0x88] sm:$0xff]  ;;  %v621_v58 = vld [vmem:[%s1054_s6 + $0x2] ss:$0 sm:$0xff] }
  0x18   :  { %126 = vmatpush.msra.mxu2 %v96_v25  ;;  %211 = vmatpush.msrb.mxu0 %v553_v55 }
  0x1a   :  { %178 = vmatpush.msrb.mxu2 %v550_v34  ;;  %212 = vmatpush.msrb.mxu0 %v552_v56  ;;  %v579_v34 = vld [vmem:[%s1052_s4 + $0xa0] sm:$0xff] }
  0x85   :  { %v58_v18 = vpop.f32.mrf.mxu0 }
  0x86   :  { %v59_v19 = vadd.f32 %v58_v18, %v36_v17 }
  0x88   :  { %623 = vtanh.f32 %v59_v19 }
  0x8e   :  { %v624_v20 = vpop.eup %623 }
  0x8f   :  { %546 = vmatmul.msk.f32.vlgmr.msra.gmra.mxu1 %vm71_vm1, %v624_v20  ;;  %v573_v20 = vld [vmem:[%s1050_s2 + $0x10] sm:$0xff] }
  0x90   :  { %302 = vmatpush.msrb.mxu1 %v573_v20  ;;  %v600_v20 = vld [vmem:[%s1052_s4 + $0xd0] sm:$0xff] }
 0x10c   :  { %v92_v27 = vpop.f32.mrf.mxu1 }
 0x10d   :  { %v93_v28 = vadd.f32 %v92_v27, %v70_v26  ;;  %v571_v27 = vld [vmem:[%s1049_s1 + $0x4] sm:$0x3] }
 0x10f   :  { %625 = vtanh.f32 %v93_v28 }
 0x115   :  { %v626_v29 = vpop.eup %625 }
 0x116   :  { %547 = vmatmul.msk.f32.vlgmr.msra.gmra.mxu2 %vm71_vm1, %v626_v29 }
 0x117   :  { %329 = vmatpush.msra.mxu2 %v582_v21  ;;  %v599_v21 = vld [vmem:[%s1052_s4 + $0xc8] sm:$0xff] }
 0x119   :  { %330 = vmatpush.msra.mxu2 %v581_v22  ;;  %v598_v22 = vld [vmem:[%s1052_s4 + $0xc0] sm:$0xff] }
 0x11b   :  { %331 = vmatpush.msra.mxu2 %v580_v23  ;;  %v614_v23 = vld [vmem:[%s1053_s5 + $0xf8] sm:$0xff] }
 0x11d   :  { %332 = vmatpush.msra.mxu2 %v579_v34  ;;  %v608_v34 = vld [vmem:[%s1053_s5 + $0xc8] sm:$0xff] }
 0x11f   :  { %333 = vmatpush.msra.mxu2 %v578_v35  ;;  %v607_v35 = vld [vmem:[%s1053_s5 + $0xc0] sm:$0xff] }
 0x121   :  { %334 = vmatpush.msra.mxu2 %v577_v36 }
 0x199   :  { %v128_v31 = vpop.f32.mrf.mxu2 }
 0x19a   :  { %v129_v32 = vadd.f32 %v619_v30, %v128_v31  ;;  %v277_v30 = vperm.slane %v571_v27, 0 }
 0x19c   :  { %627 = vtanh.f32 %v129_v32 }
 0x1a2   :  { %v628_v33 = vpop.eup %627 }
 0x1a3   :  { %138 = vrot.lane.b32.xlu0 %v628_v33, %s681_s23  ;;  %v817_v39 = vmul.f32 %v628_v33, %v132_v37  ;;  %v576_v37 = vld [vmem:[%s1052_s4 + $0x88] sm:$0xff] }
 0x1a4   :  { %335 = vmatpush.msra.mxu2 %v576_v37 }
 0x1a5   :  { %v134_v40 = vmul.f32 1.442695, %v817_v39 }
 0x1a6   :  { %336 = vmatpush.msra.mxu2 %v575_v38 }
 0x1a7   :  { %629 = vpow2.f32 %v134_v40  ;;  %v591_v40 = vld [vmem:[%s1053_s5 + $0xb8] sm:$0xff] }
 0x1a8   :  { %367 = vmatpush.msra.mxu0 %v591_v40 }
 0x1ad   :  { %v630_v41 = vpop.eup %629 }
 0x1ae   :  { %v136_v43 = vmul.f32 %v630_v41, %v734_v1  ;;  %v565_v1 = vld [vmem:[%s1053_s5 + $0x60] sm:$0xff]  ;;  %v590_v41 = vld [vmem:[%s1053_s5 + $0xb0] sm:$0xff] }
 0x1af   :  { %246 = vmatpush.msra.mxu3 %v565_v1  ;;  %368 = vmatpush.msra.mxu0 %v590_v41  ;;  %v622_v41 = vld [vmem:[%s1054_s6 + $0x3] ss:$0 sm:$0xff] }
 0x1b1   :  { %247 = vmatpush.msra.mxu3 %v564_v2  ;;  %369 = vmatpush.msra.mxu0 %v589_v42 }
 0x1b3   :  { %248 = vmatpush.msra.mxu3 %v563_v3 }
 0x1b5   :  { %249 = vmatpush.msra.mxu3 %v562_v4  ;;  %v145_v4 = vmul.f32 %v825_v46, %v817_v39 }
 0x1b7   :  { %250 = vmatpush.msra.mxu3 %v561_v5  ;;  %v146_v5 = vsel %vm37_vm0, %v145_v4, 0.0 }
 0x215   :  { %v139_v45 = vpop.permute.xlu0 %138 }
 0x216   :  { %v141_v47 = vadd.f32 %v139_v45, %v136_v43  ;;  %v572_v43 = vld [vmem:[%s1051_s3 + $0x4] sm:$0x3] }
 0x217   :  { %v283_v44 = vperm.slane %v572_v43, 0  ;;  %v317_v54 = vperm.slane %v572_v43, 1 }
 0x218   :  { %v143_v49 = vmul.f32 %v825_v46, %v141_v47 }
 0x21a   :  { %v829_v50 = vadd.f32 %v143_v49, %v749_v6  ;;  %v193_v6 = vperm.slane %v549_v60, 1  ;;  %v588_v49 = vld [vmem:[%s1053_s5 + $0xa0] sm:$0xff] }
 0x21b   :  { %370 = vmatpush.msra.mxu0 %v588_v49 }
 0x21c   :  { %v832_v51 = vmul.f32 %v153_v48, %v829_v50 }
 0x21e   :  { %551 = vmatmul.msk.f32.vlgmr.msrb.gmra.mxu2 %vm37_vm0, %v832_v51 }
 0x2a1   :  { %v180_v62 = vpop.f32.mrf.mxu2 }
 0x2a2   :  { %v181_v63 = vadd.f32 %v180_v62, %v159_v61  ;;  %v276_v61 = vsub.f32 1.0, %v571_v27  ;;  %v380_v62 = vperm.slane %v571_v27, 1 }
 0x2a4   :  { %631 = vtanh.f32 %v181_v63  ;;  %v390_v63 = vperm.slane %v276_v61, 0 }
 0x2aa   :  { %v632_v0 = vpop.eup %631 }
 0x2ab   :  { %560 = vmatmul.msk.f32.vlgmr.msrb.gmra.mxu0 %vm71_vm1, %v632_v0 }
 0x328   :  { %v214_v7 = vpop.f32.mrf.mxu0 }
 0x329   :  { %v215_v8 = vadd.f32 %v214_v7, %v193_v6  ;;  %v596_v6 = vld [vmem:[%s1050_s2 + $0x18] sm:$0xff] }
 0x32a   :  { %426 = vmatpush.msrb.mxu3 %v596_v6 }
 0x32b   :  { %633 = vtanh.f32 %v215_v8 }
 0x331   :  { %v634_v9 = vpop.eup %633 }
 0x332   :  { %570 = vmatmul.msk.f32.vlgmr.msra.gmra.mxu3 %vm71_vm1, %v634_v9 }
 0x333   :  { %491 = vmatpush.msra.mxu3 %v614_v23 }
 0x3b5   :  { %v252_v11 = vpop.f32.mrf.mxu3 }
 0x3b6   :  { %v253_v12 = vadd.f32 %v620_v10, %v252_v11  ;;  %v968_v10 = vld [vmem:[%s1049_s1 + $0x6] sm:$0x3] }
 0x3b7   :  { %v401_v46 = vperm.slane %v968_v10, 0 }
 0x3b8   :  { %635 = vtanh.f32 %v253_v12 }
 0x3be   :  { %v636_v16 = vpop.eup %635 }
 0x3bf   :  { %262 = vrot.lane.b32.xlu0 %v636_v16, %s681_s23  ;;  %v257_v17 = vmul.f32 %v636_v16, %v256_v14  ;;  %v604_v16 = vld [vmem:[%s1052_s4 + $0xf0] sm:$0xff] }
 0x3c1   :  { %v269_v18 = vmul.f32 %v266_v15, %v257_v17  ;;  %v258_v24 = vmul.f32 1.442695, %v257_v17  ;;  %v603_v17 = vld [vmem:[%s1052_s4 + $0xe8] sm:$0xff] }
 0x3c3   :  { %v270_v19 = vsel %vm37_vm0, %v269_v18, 0.0  ;;  %637 = vpow2.f32 %v258_v24  ;;  %v602_v18 = vld [vmem:[%s1052_s4 + $0xe0] sm:$0xff]  ;;  %v613_v24 = vld [vmem:[%s1053_s5 + $0xf0] sm:$0xff] }
 0x3c4   :  { %271 = vadd.xlane.f32.xlu2 %v270_v19  ;;  %v601_v19 = vld [vmem:[%s1052_s4 + $0xd8] sm:$0xff]  ;;  %492 = vmatpush.msra.mxu3 %v613_v24 }
 0x3c9   :  { %v638_v25 = vpop.eup %637 }
 0x3ca   :  { %v260_v26 = vmul.f32 %v638_v25, %v829_v50  ;;  %v587_v50 = vld [vmem:[%s1053_s5 + $0x98] sm:$0xff]  ;;  %v612_v25 = vld [vmem:[%s1053_s5 + $0xe8] sm:$0xff] }
 0x3cb   :  { %371 = vmatpush.msra.mxu0 %v587_v50  ;;  %493 = vmatpush.msra.mxu3 %v612_v25 }
 0x431   :  { %v263_v28 = vpop.permute.xlu0 %262 }
 0x432   :  { %v265_v29 = vadd.f32 %v263_v28, %v260_v26  ;;  %v595_v26 = vld [vmem:[%s1051_s3 + $0x6] sm:$0x3] }
 0x433   :  { %v407_v27 = vperm.slane %v595_v26, 0  ;;  %v441_v36 = vperm.slane %v595_v26, 1 }
 0x434   :  { %v267_v31 = vmul.f32 %v266_v15, %v265_v29  ;;  %v605_v15 = vld [vmem:[%s1052_s4 + $0xf8] sm:$0xff] }
 0x435   :  { %453 = vmatpush.msra.mxu1 %v605_v15 }
 0x436   :  { %v902_v32 = vadd.f32 %v267_v31, %v832_v51  ;;  %v586_v51 = vld [vmem:[%s1053_s5 + $0x90] sm:$0xff]  ;;  %v611_v31 = vld [vmem:[%s1053_s5 + $0xe0] sm:$0xff] }
 0x437   :  { %372 = vmatpush.msra.mxu0 %v586_v51  ;;  %454 = vmatpush.msra.mxu1 %v604_v16 }
 0x438   :  { %v905_v33 = vmul.f32 %v277_v30, %v902_v32  ;;  %494 = vmatpush.msra.mxu3 %v611_v31 }
 0x439   :  { %373 = vmatpush.msra.mxu0 %v585_v52  ;;  %455 = vmatpush.msra.mxu1 %v603_v17 }
 0x43a   :  { %574 = vmatmul.msk.f32.vlgmr.msrb.gmra.mxu1 %vm37_vm0, %v905_v33 }
 0x43b   :  { %374 = vmatpush.msra.mxu0 %v584_v53  ;;  %456 = vmatpush.msra.mxu1 %v602_v18  ;;  %v272_v53 = vpop.xlane.xlu2 %271 }
 0x43d   :  { %457 = vmatpush.msra.mxu1 %v601_v19 }
 0x43f   :  { %458 = vmatpush.msra.mxu1 %v600_v20 }
 0x441   :  { %459 = vmatpush.msra.mxu1 %v599_v21 }
 0x443   :  { %460 = vmatpush.msra.mxu1 %v598_v22 }
 0x4b7   :  { %v304_v45 = vpop.f32.mrf.mxu1 }
 0x4b8   :  { %v305_v47 = vadd.f32 %v304_v45, %v283_v44  ;;  %v400_v44 = vsub.f32 1.0, %v968_v10  ;;  %v504_v45 = vperm.slane %v968_v10, 1 }
 0x4ba   :  { %639 = vtanh.f32 %v305_v47  ;;  %v514_v47 = vperm.slane %v400_v44, 0 }
 0x4c0   :  { %v640_v48 = vpop.eup %639 }
 0x4c1   :  { %583 = vmatmul.msk.f32.vlgmr.msra.gmra.mxu2 %vm71_vm1, %v640_v48 }
 0x544   :  { %v338_v55 = vpop.f32.mrf.mxu2 }
 0x545   :  { %v339_v56 = vadd.f32 %v338_v55, %v317_v54 }
 0x547   :  { %641 = vtanh.f32 %v339_v56 }
 0x54d   :  { %v642_v57 = vpop.eup %641 }
 0x54e   :  { %593 = vmatmul.msk.f32.vlgmr.msra.gmra.mxu0 %vm71_vm1, %v642_v57 }
 0x5cb   :  { %v376_v59 = vpop.f32.mrf.mxu0 }
 0x5cc   :  { %v377_v60 = vadd.f32 %v621_v58, %v376_v59 }
 0x5ce   :  { %643 = vtanh.f32 %v377_v60 }
 0x5d4   :  { %v644_v0 = vpop.eup %643 }
 0x5d5   :  { %386 = vrot.lane.b32.xlu1 %v644_v0, %s681_s23  ;;  %v381_v1 = vmul.f32 %v644_v0, %v380_v62 }
 0x5d7   :  { %v393_v2 = vmul.f32 %v390_v63, %v381_v1  ;;  %v382_v7 = vmul.f32 1.442695, %v381_v1 }
 0x5d9   :  { %v394_v3 = vsel %vm37_vm0, %v393_v2, 0.0  ;;  %645 = vpow2.f32 %v382_v7 }
 0x5da   :  { %395 = vadd.xlane.f32.xlu2 %v394_v3 }
 0x5df   :  { %v646_v8 = vpop.eup %645 }
 0x5e0   :  { %v384_v9 = vmul.f32 %v646_v8, %v902_v32  ;;  %v610_v32 = vld [vmem:[%s1053_s5 + $0xd8] sm:$0xff] }
 0x5e1   :  { %495 = vmatpush.msra.mxu3 %v610_v32 }
 0x5ff   :  { %147 = vadd.xlane.f32.xlu1 %v146_v5 }
 0x647   :  { %v387_v11 = vpop.permute.xlu1 %386 }
 0x648   :  { %v389_v39 = vadd.f32 %v387_v11, %v384_v9 }
 0x64a   :  { %v391_v12 = vmul.f32 %v390_v63, %v389_v39 }
 0x64c   :  { %v972_v13 = vadd.f32 %v391_v12, %v905_v33  ;;  %v609_v33 = vld [vmem:[%s1053_s5 + $0xd0] sm:$0xff]  ;;  %s682_s5 = smov [#allocation2]  }
 0x64d   :  { %496 = vmatpush.msra.mxu3 %v609_v33  ;;  %v396_v55 = vpop.xlane.xlu2 %395  ;;  %s530_s6 = sshll.u32 %s682_s5, 4  ;;  %s531_s6 = int_to_ptr.vmem [resolvable:$true] %s530_s6 }
 0x64e   :  { %v975_v14 = vmul.f32 %v401_v46, %v972_v13 }
 0x64f   :  { %497 = vmatpush.msra.mxu3 %v608_v34 }
 0x650   :  { %597 = vmatmul.msk.f32.vlgmr.msrb.gmra.mxu3 %vm37_vm0, %v975_v14 }
 0x651   :  { %498 = vmatpush.msra.mxu3 %v607_v35 }
 0x672   :  { %v148_v56 = vpop.xlane.xlu1 %147 }
 0x673   :  { %v273_v59 = vadd.f32 %v272_v53, %v148_v56 }
 0x675   :  { %v397_v63 = vadd.f32 %v396_v55, %v273_v59 }
 0x6d3   :  { %v428_v28 = vpop.f32.mrf.mxu3 }
 0x6d4   :  { %v429_v29 = vadd.f32 %v428_v28, %v407_v27 }
 0x6d6   :  { %647 = vtanh.f32 %v429_v29 }
 0x6dc   :  { %v648_v30 = vpop.eup %647 }
 0x6dd   :  { %606 = vmatmul.msk.f32.vlgmr.msra.gmra.mxu1 %vm71_vm1, %v648_v30 }
 0x75a   :  { %v462_v37 = vpop.f32.mrf.mxu1 }
 0x75b   :  { %v463_v38 = vadd.f32 %v462_v37, %v441_v36 }
 0x75d   :  { %649 = vtanh.f32 %v463_v38 }
 0x763   :  { %v650_v40 = vpop.eup %649 }
 0x764   :  { %616 = vmatmul.msk.f32.vlgmr.msra.gmra.mxu3 %vm71_vm1, %v650_v40 }
 0x7e7   :  { %v500_v42 = vpop.f32.mrf.mxu3 }
 0x7e8   :  { %v501_v43 = vadd.f32 %v622_v41, %v500_v42 }
 0x7ea   :  { %651 = vtanh.f32 %v501_v43 }
 0x7f0   :  { %v652_v48 = vpop.eup %651 }
 0x7f1   :  { %510 = vrot.lane.b32.xlu0 %v652_v48, %s681_s23  ;;  %v505_v49 = vmul.f32 %v652_v48, %v504_v45 }
 0x7f3   :  { %v517_v50 = vmul.f32 %v514_v47, %v505_v49  ;;  %v506_v52 = vmul.f32 1.442695, %v505_v49 }
 0x7f5   :  { %v518_v51 = vsel %vm37_vm0, %v517_v50, 0.0  ;;  %653 = vpow2.f32 %v506_v52 }
 0x7f6   :  { %519 = vadd.xlane.f32.xlu2 %v518_v51 }
 0x7fb   :  { %v654_v54 = vpop.eup %653 }
 0x7fc   :  { %v508_v57 = vmul.f32 %v654_v54, %v972_v13 }
 0x863   :  { %v511_v58 = vpop.permute.xlu0 %510 }
 0x864   :  { %v513_v60 = vadd.f32 %v511_v58, %v508_v57 }
 0x866   :  { %v515_v61 = vmul.f32 %v514_v47, %v513_v60 }
 0x868   :  { %v516_v62 = vadd.f32 %v515_v61, %v975_v14 }
 0x869   :  { %v520_v0 = vpop.xlane.xlu2 %519 }
 0x86a   :  { %522 = vst.msk [vmem:[#allocation2] sm:$0xff] %vm37_vm0, %v516_v62  ;;  %v521_v1 = vadd.f32 %v520_v0, %v397_v63 }
 0x86b   :  { %535 = dma.vmem_to_hbm [thread:$0]  %s531_s6, 128, %s533_s29, [#allocation3]  }
 0x86c   :  { %524 = vst.msk [vmem:[%s1056_s8] sm:$0xff] %vm523_vm2, %v521_v1 }
 0x86d   :  { %679 = dma.done.wait [#allocation3], 128  }
 0x86e   :  { %680 = vsyncadd [#allocation3], 4294967168 }
 0x86f   :  { %544 = vsyncpa [#allocation3], 1 }

</bundles_post_ra>
